<compile_context>
chip_gen: v7x
topology: tpu7x:2x2x1
jax: 0.10.0
libtpu: 0.0.40
codegen_flags: <defaults>
</compile_context>

<pallas_src>
import jax
import jax.numpy as jnp
from jax import lax
from jax.experimental import pallas as pl
from jax.experimental.pallas import tpu as pltpu


_LANES = 128
_SUBLANES = 8
_CHUNK_ROWS = 512        # target rows per in-kernel sub-chunk (bounds f32 temps)
_MAX_CHUNKS = 16         # cap on unrolled sub-chunk count (code size / compile)
_MAX_BATCH_BLOCK = 8     # batch rows per block: keeps feature tiles big for big N
_NEG_BIG = -1e30         # sigmoid(_NEG_BIG) == 0 -> padded/masked logits add 0


def _round_up(a, b):
    return ((a + b - 1) // b) * b


def _chip_config():
    """Per-generation (num_feature_splits, vmem_budget_bytes, vmem_limit_bytes)."""
    try:
        vmem = int(pltpu.get_tpu_info().vmem_capacity_bytes)
    except Exception:
        # Detection failed: conservative sizing that fits every generation.
        return 1, 20 * 1024 * 1024, 48 * 1024 * 1024
    if vmem <= 64 * 1024 * 1024:
        # v7x-like: 2 TensorCores/chip but only 64 MiB VMEM per core.  Keep
        # the 2-way "parallel" feature split so each TC owns half the HBM
        # stream; cap the double-buffered input budget so blocks + sub-chunk
        # f32 temporaries stay well inside a 48 MiB scoped limit.
        return 2, 24 * 1024 * 1024, 48 * 1024 * 1024
    # v5e / v6e: single TensorCore -> a feature split would only serialize and
    # double accumulator init/writeback.  Spend the 128 MiB VMEM on big tiles
    # instead, so the ~0.35 us per-step overhead is ~2% of each step.
    return 1, 48 * 1024 * 1024, 96 * 1024 * 1024


def sigmoid_dice_loss(inputs, target, smooth=1.0, *,
                      num_splits=None,
                      vmem_budget_bytes=None,
                      vmem_limit_bytes=None):
    """Pallas implementation of SigmoidDiceLoss.forward.

    inputs : logits, shape (N, ...)  (e.g. NCHW).  bf16 logits are supported
             and halve that HBM stream (upcast happens in-kernel).
    target : same shape as inputs; binary masks may be bf16/int8 to halve the
             target stream.
    Returns a float32 scalar loss.
    """
    auto_splits, auto_budget, auto_limit = _chip_config()
    n_splits = auto_splits if num_splits is None else num_splits
    budget = auto_budget if vmem_budget_bytes is None else vmem_budget_bytes
    limit = auto_limit if vmem_limit_bytes is None else vmem_limit_bytes

    n = inputs.shape[0]
    x = inputs.reshape(n, -1)
    t = target.reshape(n, -1)
    f = x.shape[1]

    # Rows of 128 lanes per sample.  Only the sub-128 lane tail is padded
    # (<=127 elements/sample, fused with the relayout to the kernel layout);
    # all tile-level raggedness is masked inside the kernel instead.
    r_total = pl.cdiv(f, _LANES)
    pad = r_total * _LANES - f
    if pad:
        x = jnp.pad(x, ((0, 0), (0, pad)), constant_values=_NEG_BIG)
        t = jnp.pad(t, ((0, 0), (0, pad)))
    x3 = x.reshape(n, r_total, _LANES)
    t3 = t.reshape(n, r_total, _LANES)

    # Batch tiling ("parallel"): keeps per-step feature tiles large for big N.
    n_blk = min(n, _MAX_BATCH_BLOCK)
    n_bblocks = pl.cdiv(n, n_blk)

    # Use the 2-way TensorCore split only when there is enough work for both.
    if r_total < _SUBLANES * n_splits:
        n_splits = 1

    # Feature-tile rows: pick the number of tiles that fits the double-buffered
    # input budget, then divide the rows EVENLY across them (review item 2) —
    # overshoot is at most a few sublane rows and is masked, not streamed.
    isz = x.dtype.itemsize + t.dtype.itemsize
    r_budget = max(_SUBLANES,
                   (budget // (2 * n_blk * _LANES * isz)) // _SUBLANES * _SUBLANES)
    total_blocks = _round_up(max(pl.cdiv(r_total, r_budget), n_splits), n_splits)
    r_tile = _round_up(pl.cdiv(r_total, total_blocks), _SUBLANES)
    # Sub-chunk the in-kernel compute; make the chunk size divide r_tile.
    n_chunks = min(pl.cdiv(r_tile, _CHUNK_ROWS), _MAX_CHUNKS)
    r_tile = _round_up(r_tile, _SUBLANES * n_chunks)
    chunk_rows = r_tile // n_chunks
    blocks_per_split = total_blocks // n_splits

    def kernel(x_ref, t_ref, o_ref):
        # x_ref, t_ref : (n_blk, r_tile, 128) tiles of logits / targets.
        # o_ref        : (3, n_blk, 128) lane-dense accumulator, resident
        #                across the inner ("arbitrary") grid axis.
        si = pl.program_id(1)
        k = pl.program_id(2)

        @pl.when(k == 0)
        def _():
            o_ref[...] = jnp.zeros_like(o_ref)

        # Rows of this tile holding real data.  Shapes are static, so the
        # valid-row arithmetic is baked in (no scalar prefetch needed).
        g = si * blocks_per_split + k
        valid = r_total - g * r_tile

        def accumulate(masked):
            zero = jnp.zeros((n_blk, _LANES), jnp.float32)

            def body(c, carry):
                acc_i, acc_p, acc_t = carry
                row0 = pl.multiple_of(c * chunk_rows, _SUBLANES)
                xc = x_ref[:, pl.ds(row0, chunk_rows), :].astype(jnp.float32)
                tc = t_ref[:, pl.ds(row0, chunk_rows), :].astype(jnp.float32)
                if masked:
                    rows = row0 + lax.broadcasted_iota(
                        jnp.int32, (1, chunk_rows, _LANES), 1)
                    keep = rows < valid
                    xc = jnp.where(keep, xc, _NEG_BIG)   # sigmoid -> exactly 0
                    tc = jnp.where(keep, tc, 0.0)
                # exp on the EUP; the divide is fully hidden behind the HBM
                # stream (kernel is bandwidth bound).  Kept exact so the
                # result tracks the module's sigmoid closely.
                p = 1.0 / (1.0 + jnp.exp(-xc))
                return (acc_i + jnp.sum(p * tc, axis=1),
                        acc_p + jnp.sum(p, axis=1),
                        acc_t + jnp.sum(tc, axis=1))

            acc_i, acc_p, acc_t = lax.fori_loop(
                0, n_chunks, body, (zero, zero, zero), unroll=True)
            o_ref[0] += acc_i
            o_ref[1] += acc_p
            o_ref[2] += acc_t

        @pl.when(valid >= r_tile)       # hot path: no masking work at all
        def _():
            accumulate(masked=False)

        @pl.when(valid < r_tile)        # only the final boundary tile(s)
        def _():
            accumulate(masked=True)

    partials = pl.pallas_call(
        kernel,
        out_shape=jax.ShapeDtypeStruct(
            (n_bblocks, n_splits, 3, n_blk, _LANES), jnp.float32),
        grid_spec=pltpu.PrefetchScalarGridSpec(
            num_scalar_prefetch=0,
            grid=(n_bblocks, n_splits, blocks_per_split),
            in_specs=[
                pl.BlockSpec((n_blk, r_tile, _LANES),
                             lambda b, si, k: (b, si * blocks_per_split + k, 0)),
                pl.BlockSpec((n_blk, r_tile, _LANES),
                             lambda b, si, k: (b, si * blocks_per_split + k, 0)),
            ],
            out_specs=pl.BlockSpec(
                (pl.Squeezed(), pl.Squeezed(), 3, n_blk, _LANES),
                lambda b, si, k: (b, si, 0, 0, 0)),
        ),
        compiler_params=pltpu.CompilerParams(
            dimension_semantics=("parallel", "parallel", "arbitrary"),
            vmem_limit_bytes=limit,
        ),
    )(x3, t3)

    # Tiny epilogue in plain JAX: reduce splits/lanes, drop the padded batch
    # tail, and apply the dice formula (matches the PyTorch module exactly).
    sums = jnp.sum(partials, axis=(1, 4))                     # (n_bblocks, 3, n_blk)
    sums = jnp.moveaxis(sums, 1, 0).reshape(3, n_bblocks * n_blk)[:, :n]
    inter, p_sum, t_sum = sums[0], sums[1], sums[2]
    dice = 2.0 * (inter + smooth) / (p_sum + t_sum + smooth)
    return (1.0 - jnp.sum(dice) / n).astype(jnp.float32)


def _reference(inputs, target, smooth=1.0):
    n = inputs.shape[0]
    p = jax.nn.sigmoid(inputs.astype(jnp.float32)).reshape(n, -1)
    t = target.astype(jnp.float32).reshape(n, -1)
    inter = jnp.sum(p * t, axis=1)
    dice = 2.0 * (inter + smooth) / (jnp.sum(p, axis=1) + jnp.sum(t, axis=1) + smooth)
    return 1.0 - jnp.sum(dice) / n


if __name__ == "__main__":
    key = jax.random.PRNGKey(0)

    cases = [
        ((2, 4, 16, 16), jnp.float32, jnp.float32),    # aligned, single tile
        ((2, 4, 32, 32), jnp.float32, jnp.bfloat16),   # bf16 target stream
        ((2, 8, 16, 16), jnp.bfloat16, jnp.bfloat16),  # bf16 logits + targets
        ((2, 3, 10, 10), jnp.float32, jnp.float32),    # ragged F -> masked tail
        ((10, 3, 16, 16), jnp.float32, jnp.float32),   # batch-tiled (N > 8)
    ]
    for i, (shape, x_dtype, t_dtype) in enumerate(cases):
        k1, k2 = jax.random.split(jax.random.fold_in(key, i))
        x = jax.random.normal(k1, shape, dtype=jnp.float32).astype(x_dtype)
        tgt = (jax.random.uniform(k2, shape) > 0.5).astype(t_dtype)

        loss = jax.block_until_ready(sigmoid_dice_loss(x, tgt, smooth=1.0))
        ref = jax.block_until_ready(_reference(x, tgt, smooth=1.0))
        assert jnp.allclose(loss, ref, rtol=1e-5, atol=1e-5), (shape, loss, ref)

    print("KERNEL_OK")
</pallas_src>

<mosaic_0001>
module attributes {stable_mosaic.version = 11 : i64} {
  func.func @kernel(%arg0: i32, %arg1: i32, %arg2: i32, %arg3: memref<2x8x128xf32, #tpu.memory_space<vmem>>, %arg4: memref<2x8x128xf32, #tpu.memory_space<vmem>>, %arg5: memref<1x1x3x2x128xf32, #tpu.memory_space<vmem>>) attributes {dimension_semantics = [#tpu.dimension_semantics<parallel>, #tpu.dimension_semantics<parallel>, #tpu.dimension_semantics<arbitrary>], iteration_bounds = array<i64: 1, 1, 1>, scalar_prefetch = 0 : i64, scratch_operands = 0 : i64, tpu.core_type = #tpu.core_type<tc>, window_params = [{transform_indices = @transform_0, window_bounds = array<i64: 2, 8, 128>}, {transform_indices = @transform_1, window_bounds = array<i64: 2, 8, 128>}, {transform_indices = @transform_2, window_bounds = array<i64: 1, 1, 3, 2, 128>}]} {
    %c0_i32 = arith.constant 0 : i32
    %0 = arith.cmpi eq, %arg2, %c0_i32 : i32
    %1 = arith.extui %0 : i1 to i32
    %c0_i32_0 = arith.constant 0 : i32
    %2 = arith.cmpi ne, %1, %c0_i32_0 : i32
    scf.if %2 {
      %cst = arith.constant 0.000000e+00 : f32
      %13 = vector.broadcast %cst : f32 to vector<3x2x128xf32>
      %c0 = arith.constant 0 : index
      %c0_6 = arith.constant 0 : index
      %c0_7 = arith.constant 0 : index
      %c0_8 = arith.constant 0 : index
      %c0_9 = arith.constant 0 : index
      %14 = vector.load %arg5[%c0, %c0_6, %c0_7, %c0_8, %c0_9] : memref<1x1x3x2x128xf32, #tpu.memory_space<vmem>>, vector<1x1x3x2x128xf32>
      %15 = vector.shape_cast %14 : vector<1x1x3x2x128xf32> to vector<3x2x128xf32>
      %16 = vector.shape_cast %13 : vector<3x2x128xf32> to vector<1x1x3x2x128xf32>
      tpu.vector_store %arg5[%c0, %c0_6, %c0_7, %c0_8, %c0_9], %16 {strides = array<i32>} : memref<1x1x3x2x128xf32, #tpu.memory_space<vmem>>, vector<1x1x3x2x128xf32>,
    } else {
    }
    %c1_i32 = arith.constant 1 : i32
    %3 = arith.muli %arg1, %c1_i32 : i32
    %4 = arith.addi %3, %arg2 : i32
    %c8_i32 = arith.constant 8 : i32
    %5 = arith.muli %4, %c8_i32 : i32
    %c8_i32_1 = arith.constant 8 : i32
    %6 = arith.subi %c8_i32_1, %5 : i32
    %c8_i32_2 = arith.constant 8 : i32
    %7 = arith.cmpi sge, %6, %c8_i32_2 : i32
    %8 = arith.extui %7 : i1 to i32
    %c0_i32_3 = arith.constant 0 : i32
    %9 = arith.cmpi ne, %8, %c0_i32_3 : i32
    scf.if %9 {
      %cst = arith.constant 0.000000e+00 : f32
      %13 = vector.broadcast %cst : f32 to vector<2x128xf32>
      %c0_i32_6 = arith.constant 0 : i32
      %c8_i32_7 = arith.constant 8 : i32
      %14 = arith.muli %c0_i32_6, %c8_i32_7 : i32
      %15 = tpu.assume_multiple %14, 8 : i32
      %c0 = arith.constant 0 : index
      %16 = arith.index_cast %15 : i32 to index
      %c0_8 = arith.constant 0 : index
      %17 = vector.load %arg3[%c0, %16, %c0_8] : memref<2x8x128xf32, #tpu.memory_space<vmem>>, vector<2x8x128xf32>
      %c0_9 = arith.constant 0 : index
      %18 = arith.index_cast %15 : i32 to index
      %c0_10 = arith.constant 0 : index
      %19 = vector.load %arg4[%c0_9, %18, %c0_10] : memref<2x8x128xf32, #tpu.memory_space<vmem>>, vector<2x8x128xf32>
      %cst_11 = arith.constant 0.000000e+00 : f32
      %20 = vector.broadcast %cst_11 : f32 to vector<2x8x128xf32>
      %21 = arith.subf %20, %17 : vector<2x8x128xf32>
      %22 = math.exp %21 : vector<2x8x128xf32>
      %cst_12 = arith.constant 1.000000e+00 : f32
      %23 = vector.broadcast %cst_12 : f32 to vector<2x8x128xf32>
      %24 = arith.addf %23, %22 : vector<2x8x128xf32>
      %cst_13 = arith.constant 1.000000e+00 : f32
      %25 = vector.broadcast %cst_13 : f32 to vector<2x8x128xf32>
      %26 = arith.divf %25, %24 : vector<2x8x128xf32>
      %27 = arith.mulf %26, %19 : vector<2x8x128xf32>
      %cst_14 = arith.constant dense<0.000000e+00> : vector<2x128xf32>
      %28 = vector.multi_reduction <add>, %27, %cst_14 [1] : vector<2x8x128xf32> to vector<2x128xf32>
      %29 = arith.addf %13, %28 : vector<2x128xf32>
      %cst_15 = arith.constant dense<0.000000e+00> : vector<2x128xf32>
      %30 = vector.multi_reduction <add>, %26, %cst_15 [1] : vector<2x8x128xf32> to vector<2x128xf32>
      %31 = arith.addf %13, %30 : vector<2x128xf32>
      %cst_16 = arith.constant dense<0.000000e+00> : vector<2x128xf32>
      %32 = vector.multi_reduction <add>, %19, %cst_16 [1] : vector<2x8x128xf32> to vector<2x128xf32>
      %33 = arith.addf %13, %32 : vector<2x128xf32>
      %c1_i32_17 = arith.constant 1 : i32
      %c0_18 = arith.constant 0 : index
      %c0_19 = arith.constant 0 : index
      %c0_20 = arith.constant 0 : index
      %c0_21 = arith.constant 0 : index
      %c0_22 = arith.constant 0 : index
      %34 = vector.load %arg5[%c0_18, %c0_19, %c0_20, %c0_21, %c0_22] : memref<1x1x3x2x128xf32, #tpu.memory_space<vmem>>, vector<1x1x1x2x128xf32>
      %35 = vector.shape_cast %34 : vector<1x1x1x2x128xf32> to vector<2x128xf32>
      %36 = arith.addf %35, %29 : vector<2x128xf32>
      %c0_23 = arith.constant 0 : index
      %c0_24 = arith.constant 0 : index
      %c0_25 = arith.constant 0 : index
      %c0_26 = arith.constant 0 : index
      %c0_27 = arith.constant 0 : index
      %37 = vector.load %arg5[%c0_23, %c0_24, %c0_25, %c0_26, %c0_27] : memref<1x1x3x2x128xf32, #tpu.memory_space<vmem>>, vector<1x1x1x2x128xf32>
      %38 = vector.shape_cast %37 : vector<1x1x1x2x128xf32> to vector<2x128xf32>
      %39 = vector.shape_cast %36 : vector<2x128xf32> to vector<1x1x1x2x128xf32>
      tpu.vector_store %arg5[%c0_23, %c0_24, %c0_25, %c0_26, %c0_27], %39 {strides = array<i32>} : memref<1x1x3x2x128xf32, #tpu.memory_space<vmem>>, vector<1x1x1x2x128xf32>,
      %c0_28 = arith.constant 0 : index
      %c0_29 = arith.constant 0 : index
      %c1 = arith.constant 1 : index
      %c0_30 = arith.constant 0 : index
      %c0_31 = arith.constant 0 : index
      %40 = vector.load %arg5[%c0_28, %c0_29, %c1, %c0_30, %c0_31] : memref<1x1x3x2x128xf32, #tpu.memory_space<vmem>>, vector<1x1x1x2x128xf32>
      %41 = vector.shape_cast %40 : vector<1x1x1x2x128xf32> to vector<2x128xf32>
      %42 = arith.addf %41, %31 : vector<2x128xf32>
      %c0_32 = arith.constant 0 : index
      %c0_33 = arith.constant 0 : index
      %c1_34 = arith.constant 1 : index
      %c0_35 = arith.constant 0 : index
      %c0_36 = arith.constant 0 : index
      %43 = vector.load %arg5[%c0_32, %c0_33, %c1_34, %c0_35, %c0_36] : memref<1x1x3x2x128xf32, #tpu.memory_space<vmem>>, vector<1x1x1x2x128xf32>
      %44 = vector.shape_cast %43 : vector<1x1x1x2x128xf32> to vector<2x128xf32>
      %45 = vector.shape_cast %42 : vector<2x128xf32> to vector<1x1x1x2x128xf32>
      tpu.vector_store %arg5[%c0_32, %c0_33, %c1_34, %c0_35, %c0_36], %45 {strides = array<i32>} : memref<1x1x3x2x128xf32, #tpu.memory_space<vmem>>, vector<1x1x1x2x128xf32>,
      %c0_37 = arith.constant 0 : index
      %c0_38 = arith.constant 0 : index
      %c2 = arith.constant 2 : index
      %c0_39 = arith.constant 0 : index
      %c0_40 = arith.constant 0 : index
      %46 = vector.load %arg5[%c0_37, %c0_38, %c2, %c0_39, %c0_40] : memref<1x1x3x2x128xf32, #tpu.memory_space<vmem>>, vector<1x1x1x2x128xf32>
      %47 = vector.shape_cast %46 : vector<1x1x1x2x128xf32> to vector<2x128xf32>
      %48 = arith.addf %47, %33 : vector<2x128xf32>
      %c0_41 = arith.constant 0 : index
      %c0_42 = arith.constant 0 : index
      %c2_43 = arith.constant 2 : index
      %c0_44 = arith.constant 0 : index
      %c0_45 = arith.constant 0 : index
      %49 = vector.load %arg5[%c0_41, %c0_42, %c2_43, %c0_44, %c0_45] : memref<1x1x3x2x128xf32, #tpu.memory_space<vmem>>, vector<1x1x1x2x128xf32>
      %50 = vector.shape_cast %49 : vector<1x1x1x2x128xf32> to vector<2x128xf32>
      %51 = vector.shape_cast %48 : vector<2x128xf32> to vector<1x1x1x2x128xf32>
      tpu.vector_store %arg5[%c0_41, %c0_42, %c2_43, %c0_44, %c0_45], %51 {strides = array<i32>} : memref<1x1x3x2x128xf32, #tpu.memory_space<vmem>>, vector<1x1x1x2x128xf32>,
    } else {
    }
    %c8_i32_4 = arith.constant 8 : i32
    %10 = arith.cmpi slt, %6, %c8_i32_4 : i32
    %11 = arith.extui %10 : i1 to i32
    %c0_i32_5 = arith.constant 0 : i32
    %12 = arith.cmpi ne, %11, %c0_i32_5 : i32
    scf.if %12 {
      %cst = arith.constant 0.000000e+00 : f32
      %13 = vector.broadcast %cst : f32 to vector<2x128xf32>
      %c0_i32_6 = arith.constant 0 : i32
      %c8_i32_7 = arith.constant 8 : i32
      %14 = arith.muli %c0_i32_6, %c8_i32_7 : i32
      %15 = tpu.assume_multiple %14, 8 : i32
      %c0 = arith.constant 0 : index
      %16 = arith.index_cast %15 : i32 to index
      %c0_8 = arith.constant 0 : index
      %17 = vector.load %arg3[%c0, %16, %c0_8] : memref<2x8x128xf32, #tpu.memory_space<vmem>>, vector<2x8x128xf32>
      %c0_9 = arith.constant 0 : index
      %18 = arith.index_cast %15 : i32 to index
      %c0_10 = arith.constant 0 : index
      %19 = vector.load %arg4[%c0_9, %18, %c0_10] : memref<2x8x128xf32, #tpu.memory_space<vmem>>, vector<2x8x128xf32>
      %20 = tpu.iota {dimensions = array<i32: 1>} : vector<1x8x128xi32>
      %21 = vector.broadcast %15 : i32 to vector<1x8x128xi32>
      %22 = arith.addi %21, %20 : vector<1x8x128xi32>
      %23 = vector.broadcast %6 : i32 to vector<1x8x128xi32>
      %24 = arith.cmpi slt, %22, %23 : vector<1x8x128xi32>
      %cst_11 = arith.constant -1.000000e+30 : f32
      %25 = vector.shape_cast %24 : vector<1x8x128xi1> to vector<1x8x128xi1>
      %26 = vector.broadcast %25 : vector<1x8x128xi1> to vector<2x8x128xi1>
      %27 = vector.broadcast %cst_11 : f32 to vector<2x8x128xf32>
      %28 = arith.select %26, %17, %27 : vector<2x8x128xi1>, vector<2x8x128xf32>
      %cst_12 = arith.constant 0.000000e+00 : f32
      %29 = vector.shape_cast %24 : vector<1x8x128xi1> to vector<1x8x128xi1>
      %30 = vector.broadcast %29 : vector<1x8x128xi1> to vector<2x8x128xi1>
      %31 = vector.broadcast %cst_12 : f32 to vector<2x8x128xf32>
      %32 = arith.select %30, %19, %31 : vector<2x8x128xi1>, vector<2x8x128xf32>
      %cst_13 = arith.constant 0.000000e+00 : f32
      %33 = vector.broadcast %cst_13 : f32 to vector<2x8x128xf32>
      %34 = arith.subf %33, %28 : vector<2x8x128xf32>
      %35 = math.exp %34 : vector<2x8x128xf32>
      %cst_14 = arith.constant 1.000000e+00 : f32
      %36 = vector.broadcast %cst_14 : f32 to vector<2x8x128xf32>
      %37 = arith.addf %36, %35 : vector<2x8x128xf32>
      %cst_15 = arith.constant 1.000000e+00 : f32
      %38 = vector.broadcast %cst_15 : f32 to vector<2x8x128xf32>
      %39 = arith.divf %38, %37 : vector<2x8x128xf32>
      %40 = arith.mulf %39, %32 : vector<2x8x128xf32>
      %cst_16 = arith.constant dense<0.000000e+00> : vector<2x128xf32>
      %41 = vector.multi_reduction <add>, %40, %cst_16 [1] : vector<2x8x128xf32> to vector<2x128xf32>
      %42 = arith.addf %13, %41 : vector<2x128xf32>
      %cst_17 = arith.constant dense<0.000000e+00> : vector<2x128xf32>
      %43 = vector.multi_reduction <add>, %39, %cst_17 [1] : vector<2x8x128xf32> to vector<2x128xf32>
      %44 = arith.addf %13, %43 : vector<2x128xf32>
      %cst_18 = arith.constant dense<0.000000e+00> : vector<2x128xf32>
      %45 = vector.multi_reduction <add>, %32, %cst_18 [1] : vector<2x8x128xf32> to vector<2x128xf32>
      %46 = arith.addf %13, %45 : vector<2x128xf32>
      %c1_i32_19 = arith.constant 1 : i32
      %c0_20 = arith.constant 0 : index
      %c0_21 = arith.constant 0 : index
      %c0_22 = arith.constant 0 : index
      %c0_23 = arith.constant 0 : index
      %c0_24 = arith.constant 0 : index
      %47 = vector.load %arg5[%c0_20, %c0_21, %c0_22, %c0_23, %c0_24] : memref<1x1x3x2x128xf32, #tpu.memory_space<vmem>>, vector<1x1x1x2x128xf32>
      %48 = vector.shape_cast %47 : vector<1x1x1x2x128xf32> to vector<2x128xf32>
      %49 = arith.addf %48, %42 : vector<2x128xf32>
      %c0_25 = arith.constant 0 : index
      %c0_26 = arith.constant 0 : index
      %c0_27 = arith.constant 0 : index
      %c0_28 = arith.constant 0 : index
      %c0_29 = arith.constant 0 : index
      %50 = vector.load %arg5[%c0_25, %c0_26, %c0_27, %c0_28, %c0_29] : memref<1x1x3x2x128xf32, #tpu.memory_space<vmem>>, vector<1x1x1x2x128xf32>
      %51 = vector.shape_cast %50 : vector<1x1x1x2x128xf32> to vector<2x128xf32>
      %52 = vector.shape_cast %49 : vector<2x128xf32> to vector<1x1x1x2x128xf32>
      tpu.vector_store %arg5[%c0_25, %c0_26, %c0_27, %c0_28, %c0_29], %52 {strides = array<i32>} : memref<1x1x3x2x128xf32, #tpu.memory_space<vmem>>, vector<1x1x1x2x128xf32>,
      %c0_30 = arith.constant 0 : index
      %c0_31 = arith.constant 0 : index
      %c1 = arith.constant 1 : index
      %c0_32 = arith.constant 0 : index
      %c0_33 = arith.constant 0 : index
      %53 = vector.load %arg5[%c0_30, %c0_31, %c1, %c0_32, %c0_33] : memref<1x1x3x2x128xf32, #tpu.memory_space<vmem>>, vector<1x1x1x2x128xf32>
      %54 = vector.shape_cast %53 : vector<1x1x1x2x128xf32> to vector<2x128xf32>
      %55 = arith.addf %54, %44 : vector<2x128xf32>
      %c0_34 = arith.constant 0 : index
      %c0_35 = arith.constant 0 : index
      %c1_36 = arith.constant 1 : index
      %c0_37 = arith.constant 0 : index
      %c0_38 = arith.constant 0 : index
      %56 = vector.load %arg5[%c0_34, %c0_35, %c1_36, %c0_37, %c0_38] : memref<1x1x3x2x128xf32, #tpu.memory_space<vmem>>, vector<1x1x1x2x128xf32>
      %57 = vector.shape_cast %56 : vector<1x1x1x2x128xf32> to vector<2x128xf32>
      %58 = vector.shape_cast %55 : vector<2x128xf32> to vector<1x1x1x2x128xf32>
      tpu.vector_store %arg5[%c0_34, %c0_35, %c1_36, %c0_37, %c0_38], %58 {strides = array<i32>} : memref<1x1x3x2x128xf32, #tpu.memory_space<vmem>>, vector<1x1x1x2x128xf32>,
      %c0_39 = arith.constant 0 : index
      %c0_40 = arith.constant 0 : index
      %c2 = arith.constant 2 : index
      %c0_41 = arith.constant 0 : index
      %c0_42 = arith.constant 0 : index
      %59 = vector.load %arg5[%c0_39, %c0_40, %c2, %c0_41, %c0_42] : memref<1x1x3x2x128xf32, #tpu.memory_space<vmem>>, vector<1x1x1x2x128xf32>
      %60 = vector.shape_cast %59 : vector<1x1x1x2x128xf32> to vector<2x128xf32>
      %61 = arith.addf %60, %46 : vector<2x128xf32>
      %c0_43 = arith.constant 0 : index
      %c0_44 = arith.constant 0 : index
      %c2_45 = arith.constant 2 : index
      %c0_46 = arith.constant 0 : index
      %c0_47 = arith.constant 0 : index
      %62 = vector.load %arg5[%c0_43, %c0_44, %c2_45, %c0_46, %c0_47] : memref<1x1x3x2x128xf32, #tpu.memory_space<vmem>>, vector<1x1x1x2x128xf32>
      %63 = vector.shape_cast %62 : vector<1x1x1x2x128xf32> to vector<2x128xf32>
      %64 = vector.shape_cast %61 : vector<2x128xf32> to vector<1x1x1x2x128xf32>
      tpu.vector_store %arg5[%c0_43, %c0_44, %c2_45, %c0_46, %c0_47], %64 {strides = array<i32>} : memref<1x1x3x2x128xf32, #tpu.memory_space<vmem>>, vector<1x1x1x2x128xf32>,
    } else {
    }
    return
  }
  func.func @transform_0(%arg0: i32, %arg1: i32, %arg2: i32) -> (i32, i32, i32) {
    %c1_i32 = arith.constant 1 : i32
    %0 = arith.muli %arg1, %c1_i32 : i32
    %1 = arith.addi %0, %arg2 : i32
    %c0_i32 = arith.constant 0 : i32
    %c0_i32_0 = arith.constant 0 : i32
    return %arg0, %1, %c0_i32 : i32, i32, i32
  }
  func.func @transform_1(%arg0: i32, %arg1: i32, %arg2: i32) -> (i32, i32, i32) {
    %c1_i32 = arith.constant 1 : i32
    %0 = arith.muli %arg1, %c1_i32 : i32
    %1 = arith.addi %0, %arg2 : i32
    %c0_i32 = arith.constant 0 : i32
    %c0_i32_0 = arith.constant 0 : i32
    return %arg0, %1, %c0_i32 : i32, i32, i32
  }
  func.func @transform_2(%arg0: i32, %arg1: i32, %arg2: i32) -> (i32, i32, i32, i32, i32) {
    %c0_i32 = arith.constant 0 : i32
    %c0_i32_0 = arith.constant 0 : i32
    %c0_i32_1 = arith.constant 0 : i32
    %c0_i32_2 = arith.constant 0 : i32
    return %arg0, %arg1, %c0_i32, %c0_i32_0, %c0_i32_1 : i32, i32, i32, i32, i32
  }
}

</mosaic_0001>

<bundles_post_ra>
// kernel: tpu_custom_call.1
= control target key start
LH: loop header
LB: loop body
LE: loop exit
PB: predicated region body
PF: predicated region fallthrough
CT: control target
= control target key end

     0   :  { %7 = vsyncpa [#allocation3], 0  ;;  %s414_s0 = inlined_call_operand.hbm [shape: f32[2,8,128], index: 0, kind: input, shape index: {}]   ;;  %s415_s1 = inlined_call_operand.hbm [shape: f32[2,8,128], index: 1, kind: input, shape index: {}]   ;;  %s416_s2 = inlined_call_operand.hbm [shape: f32[1,1,3,2,128], index: 2, kind: output, shape index: {}]  }
   0x1   :  { %8 = vsyncpa [#allocation6], 0 }
   0x2   :  { %9 = vsyncpa [#allocation4], 0  ;;  %s352_s9 = smov [#allocation2]   ;;  %s280_s13 = scalar_lea.hbm %s414_s0, 256 }
   0x3   :  { %s18_s10 = sshll.u32 %s352_s9, 4  ;;  %p281_p0 = scmp.ne.s32.totalorder %s414_s0, %s280_s13  ;;  %s19_s10 = int_to_ptr.vmem [resolvable:$true] %s18_s10 }
   0x4   :  { %p284_p1 = scmp.lt.u32.totalorder %s280_s13, %s414_s0 }
   0x6   :  { %p286_p2 = pnand %p284_p1, %p281_p0 }
   0x8   :  { %289 = shalt.err (!%p286_p2)
}
   0x9   :  { %s290_s18 = scalar_lea.vmem %s19_s10, 256  ;;  %p295_p4 = scmp.lt.s32.totalorder %s19_s10, %s19_s10 }
   0xa   :  { %p291_p3 = scmp.ne.s32.totalorder %s19_s10, %s290_s18  ;;  %p296_p5 = scmp.lt.s32.totalorder %s290_s18, %s290_s18 }
   0xc   :  { %p297_p6 = por %p296_p5, %p295_p4 }
   0xe   :  { %p298_p7 = pnand %p297_p6, %p291_p3 }
  0x10   :  { %301 = shalt.err (!%p298_p7)
}
  0x11   :  { %s353_s19 = smov 128   ;;  %s354_s20 = smov 8  }
  0x12   :  { %24 = dma.hbm_to_vmem [thread:$0]  %s414_s0, 256, %s19_s10, [#allocation3], %s353_s19, %s353_s19, %s354_s20  }
  0x13   :  { %s355_s23 = smov [#allocation5]   ;;  %s302_s27 = scalar_lea.hbm %s415_s1, 256 }
  0x14   :  { %s33_s24 = sshll.u32 %s355_s23, 4  ;;  %p303_p8 = scmp.ne.s32.totalorder %s415_s1, %s302_s27  ;;  %s34_s24 = int_to_ptr.vmem [resolvable:$true] %s33_s24 }
  0x15   :  { %p306_p9 = scmp.lt.u32.totalorder %s302_s27, %s415_s1 }
  0x17   :  { %p308_p10 = pnand %p306_p9, %p303_p8 }
  0x19   :  { %311 = shalt.err (!%p308_p10)
}
  0x1a   :  { %s312_s4 = scalar_lea.vmem %s34_s24, 256  ;;  %p317_p12 = scmp.lt.s32.totalorder %s34_s24, %s34_s24 }
  0x1b   :  { %p313_p11 = scmp.ne.s32.totalorder %s34_s24, %s312_s4  ;;  %p318_p13 = scmp.lt.s32.totalorder %s312_s4, %s312_s4 }
  0x1d   :  { %p319_p0 = por %p318_p13, %p317_p12 }
  0x1f   :  { %p320_p1 = pnand %p319_p0, %p313_p11 }
  0x21   :  { %323 = shalt.err (!%p320_p1)
}
  0x22   :  { %39 = dma.hbm_to_vmem [thread:$0]  %s415_s1, 256, %s34_s24, [#allocation6], %s353_s19, %s353_s19, %s354_s20  }
  0x23   :  { %346 = dma.done.wait [#allocation3], 256  }
  0x24   :  { %347 = vsyncadd [#allocation3], 4294967040 }
  0x25   :  { %348 = dma.done.wait [#allocation6], 256  }
  0x26   :  { %349 = vsyncadd [#allocation6], 4294967040  ;;  %v356_v0 = vmov 0.0   ;;  %v62_v1 = vld [vmem:[#allocation2] sm:$0xff]  ;;  %v63_v2 = vld [vmem:[#allocation2 + $0x8] sm:$0xff]  ;;  %vm125_vm0 = vcmask 1041409  }
  0x27   :  { %52 = vst [vmem:[#allocation7] sm:$0x3] %v356_v0  ;;  %53 = vst [vmem:[#allocation7 + $0x2] sm:$0x3] %v356_v0  ;;  %v64_v3 = vld [vmem:[#allocation5] sm:$0xff]  ;;  %v65_v4 = vld [vmem:[#allocation5 + $0x8] sm:$0xff] }
  0x28   :  { %54 = vst [vmem:[#allocation7 + $0x4] sm:$0x3] %v356_v0  ;;  %v66_v5 = vsub.f32 0.0, %v62_v1  ;;  %v67_v6 = vsub.f32 0.0, %v63_v2  ;;  %v108_v7 = vrot.slane %v64_v3, 4  ;;  %v114_v8 = vrot.slane %v65_v4, 4 }
  0x29   :  { %s357_s1 = smov [#allocation7]  }
  0x2a   :  { %v68_v9 = vmul.f32 1.442695, %v66_v5  ;;  %v70_v10 = vmul.f32 1.442695, %v67_v6  ;;  %v109_v11 = vadd.f32 %v108_v7, %v64_v3  ;;  %v115_v12 = vadd.f32 %v114_v8, %v65_v4  ;;  %s251_s6 = sshll.u32 %s357_s1, 4  ;;  %s252_s6 = int_to_ptr.vmem [resolvable:$true] %s251_s6 }
  0x2b   :  { %s324_s7 = scalar_lea.vmem %s252_s6, 96  ;;  %p329_p3 = scmp.lt.s32.totalorder %s252_s6, %s252_s6 }
  0x2c   :  { %272 = vpow2.f32 %v68_v9  ;;  %v110_v13 = vrot.slane %v109_v11, 2  ;;  %v116_v14 = vrot.slane %v115_v12, 2  ;;  %p325_p2 = scmp.ne.s32.totalorder %s252_s6, %s324_s7  ;;  %p330_p4 = scmp.lt.s32.totalorder %s324_s7, %s324_s7 }
  0x2d   :  { %274 = vpow2.f32 %v70_v10 }
  0x2e   :  { %v111_v15 = vadd.f32 %v110_v13, %v109_v11  ;;  %v117_v16 = vadd.f32 %v116_v14, %v115_v12  ;;  %v131_v54 = vld [vmem:[#allocation7 + $0x2] sm:$0x3]  ;;  %v122_v57 = vld [vmem:[#allocation7] sm:$0x3]  ;;  %p331_p5 = por %p330_p4, %p329_p3 }
  0x2f   :  { %v139_v21 = vld [vmem:[#allocation7 + $0x4] sm:$0x3] }
  0x30   :  { %v112_v17 = vrot.slane %v111_v15, 1  ;;  %v118_v18 = vrot.slane %v117_v16, 1  ;;  %p332_p6 = pnand %p331_p5, %p325_p2 }
  0x32   :  { %v113_v19 = vadd.f32 %v112_v17, %v111_v15  ;;  %v119_v20 = vadd.f32 %v118_v18, %v117_v16 }
  0x34   :  { %v142_v22 = vsel %vm125_vm0, %v119_v20, %v113_v19 }
  0x35   :  { %v144_v24 = vadd.f32 %v142_v22, %v139_v21 }
  0x36   :  { %v273_v23 = vpop.eup %272 }
  0x37   :  { %v275_v25 = vpop.eup %274  ;;  %v72_v26 = vadd.f32 1.0, %v273_v23  ;;  %145 = vst [vmem:[#allocation7 + $0x4] sm:$0x3] %v144_v24 }
  0x38   :  { %v73_v27 = vadd.f32 1.0, %v275_v25 }
  0x39   :  { %276 = vrcp.f32 %v72_v26 }
  0x3a   :  { %278 = vrcp.f32 %v73_v27 }
  0x43   :  { %v277_v28 = vpop.eup %276 }
  0x44   :  { %v279_v29 = vpop.eup %278  ;;  %v78_v30 = vmul.f32 %v277_v28, %v64_v3  ;;  %v94_v31 = vrot.slane %v277_v28, 4 }
  0x45   :  { %v79_v32 = vmul.f32 %v279_v29, %v65_v4  ;;  %v100_v33 = vrot.slane %v279_v29, 4 }
  0x46   :  { %v80_v34 = vrot.slane %v78_v30, 4  ;;  %v95_v35 = vadd.f32 %v277_v28, %v94_v31 }
  0x47   :  { %v86_v36 = vrot.slane %v79_v32, 4  ;;  %v101_v37 = vadd.f32 %v279_v29, %v100_v33 }
  0x48   :  { %v81_v38 = vadd.f32 %v80_v34, %v78_v30  ;;  %v96_v39 = vrot.slane %v95_v35, 2 }
  0x49   :  { %v87_v40 = vadd.f32 %v86_v36, %v79_v32  ;;  %v102_v41 = vrot.slane %v101_v37, 2 }
  0x4a   :  { %v82_v42 = vrot.slane %v81_v38, 2  ;;  %v97_v43 = vadd.f32 %v96_v39, %v95_v35 }
  0x4b   :  { %v88_v44 = vrot.slane %v87_v40, 2  ;;  %v103_v45 = vadd.f32 %v102_v41, %v101_v37 }
  0x4c   :  { %v83_v46 = vadd.f32 %v82_v42, %v81_v38  ;;  %v98_v47 = vrot.slane %v97_v43, 1 }
  0x4d   :  { %v89_v48 = vadd.f32 %v88_v44, %v87_v40  ;;  %v104_v49 = vrot.slane %v103_v45, 1 }
  0x4e   :  { %v84_v50 = vrot.slane %v83_v46, 1  ;;  %v99_v51 = vadd.f32 %v98_v47, %v97_v43 }
  0x4f   :  { %v90_v52 = vrot.slane %v89_v48, 1  ;;  %v105_v53 = vadd.f32 %v104_v49, %v103_v45 }
  0x50   :  { %v85_v55 = vadd.f32 %v84_v50, %v83_v46 }
  0x51   :  { %v91_v56 = vadd.f32 %v90_v52, %v89_v48  ;;  %v134_v58 = vsel %vm125_vm0, %v105_v53, %v99_v51 }
  0x52   :  { %v136_v59 = vadd.f32 %v134_v58, %v131_v54 }
  0x53   :  { %v126_v60 = vsel %vm125_vm0, %v91_v56, %v85_v55 }
  0x54   :  { %v128_v61 = vadd.f32 %v126_v60, %v122_v57  ;;  %137 = vst [vmem:[#allocation7 + $0x2] sm:$0x3] %v136_v59 }
  0x56   :  { %129 = vst [vmem:[#allocation7] sm:$0x3] %v128_v61 }
  0x57   :  { %335 = shalt.err (!%p332_p6)
}
  0x58   :  { %s336_s10 = scalar_lea.hbm %s416_s2, 96 }
  0x59   :  { %p337_p7 = scmp.ne.s32.totalorder %s416_s2, %s336_s10  ;;  %p340_p8 = scmp.lt.u32.totalorder %s336_s10, %s416_s2 }
  0x5b   :  { %p342_p9 = pnand %p340_p8, %p337_p7 }
  0x5d   :  { %345 = shalt.err (!%p342_p9)
}
  0x5e   :  { %s358_s15 = smov 32   ;;  %s359_s16 = smov 2  }
  0x5f   :  { %257 = dma.vmem_to_hbm [thread:$0]  %s252_s6, 96, %s416_s2, [#allocation4], %s358_s15, %s358_s15, %s359_s16  }
  0x60   :  { %350 = dma.done.wait [#allocation4], 96  }
  0x61   :  { %351 = vsyncadd [#allocation4], 4294967200 }
  0x62   :  { %261 = vsyncpa [#allocation3], 1 }
  0x63   :  { %262 = vsyncpa [#allocation6], 1 }
  0x64   :  { %263 = vsyncpa [#allocation4], 1 }

</bundles_post_ra>
